<compile_context>
chip_gen: v6e
topology: v6e:2x2x1
jax: 0.10.0
libtpu: 0.0.40
codegen_flags: <defaults>
</compile_context>

<pallas_src>
import functools

import jax
import jax.numpy as jnp
from jax.experimental import pallas as pl
from jax.experimental.pallas import tpu as pltpu

_SUBLANE = 8
_LANE = 128


def policy_net_kernel(x_ref, w1_ref, b1_ref, w2_ref, b2_ref, o_ref, *,
                      n_actions, state_dim):
    """Fused fc1 -> ReLU -> fc2 -> softmax for one batch tile."""
    x = x_ref[...]                                   # [TB, S]
    w1 = w1_ref[...]                                 # [S, H]

    # fc1 on the VPU: K = S is tiny, so unrolled broadcast-multiply-adds avoid
    # the MXU fill/drain latency of a degenerate [TB, 4] x [4, H] matmul.
    h = x[:, 0:1] * w1[0:1, :]
    for k in range(1, state_dim):                    # static unroll (S is small)
        h = h + x[:, k:k + 1] * w1[k:k + 1, :]
    h = jnp.maximum(h + b1_ref[...], 0.0)            # + bias (broadcast [1, H]), ReLU

    # fc2 on the MXU: N is padded to 128 lanes -> lane-dense result & store.
    logits = jnp.dot(h, w2_ref[...], preferred_element_type=jnp.float32)
    logits = logits + b2_ref[...]                    # broadcast [1, A_pad]

    # Mask the zero-padded action columns so they do not pollute the softmax.
    col = jax.lax.broadcasted_iota(jnp.int32, logits.shape, dimension=1)
    valid = col < n_actions
    neg_big = jnp.float32(-1e30)
    logits = jnp.where(valid, logits, neg_big)

    # Numerically-stable softmax over the action axis.  Padded columns are
    # zeroed explicitly and the divide is exact so each row sums to 1.
    m = jnp.max(logits, axis=1, keepdims=True)
    e = jnp.where(valid, jnp.exp(logits - m), 0.0)
    denom = jnp.sum(e, axis=1, keepdims=True)
    o_ref[...] = (e / denom).astype(o_ref.dtype)


def _round_up(n, m):
    return ((n + m - 1) // m) * m


def policy_net_forward(x, w1, b1, w2, b2, *, tb=128):
    """x: [B, S] float32; returns softmax action probabilities [B, A]."""
    B, S = x.shape
    H = w1.shape[1]
    A = w2.shape[1]

    # Lane-dense output width and a batch tile that is a multiple of the sublane.
    A_pad = max(_round_up(A, _LANE), _LANE)
    tb = min(tb, _round_up(B, _SUBLANE))
    tb = _round_up(tb, _SUBLANE)
    B_pad = _round_up(B, tb)

    x_p = x if B_pad == B else jnp.pad(x, ((0, B_pad - B), (0, 0)))
    w2_p = jnp.pad(w2, ((0, 0), (0, A_pad - A)))
    b2_p = jnp.pad(b2, ((0, 0), (0, A_pad - A)))

    kernel = functools.partial(policy_net_kernel, n_actions=A, state_dim=S)

    cost = pl.CostEstimate(
        flops=2 * B_pad * (S * H + H * A_pad),
        transcendentals=B_pad * A_pad,                 # exp
        bytes_accessed=4 * (B_pad * S + S * H + H + H * A_pad + A_pad
                            + B_pad * A_pad),
    )

    out = pl.pallas_call(
        kernel,
        out_shape=jax.ShapeDtypeStruct((B_pad, A_pad), jnp.float32),
        grid=(B_pad // tb,),
        in_specs=[
            pl.BlockSpec((tb, S), lambda i: (i, 0)),       # activations stream
            pl.BlockSpec((S, H), lambda i: (0, 0)),        # weights stay resident
            pl.BlockSpec((1, H), lambda i: (0, 0)),
            pl.BlockSpec((H, A_pad), lambda i: (0, 0)),
            pl.BlockSpec((1, A_pad), lambda i: (0, 0)),
        ],
        out_specs=pl.BlockSpec((tb, A_pad), lambda i: (i, 0)),
        compiler_params=pltpu.CompilerParams(
            dimension_semantics=("parallel",)),            # v7x: 2 TCs share tiles
        cost_estimate=cost,
    )(x_p, w1, b1, w2_p, b2_p)

    # Drop batch padding and the padded (always-zero) action columns.
    return out[:B, :A]


def init_params(key, state_dim, hidden_dim, action_dim):
    """Deterministic init mimicking torch.nn.Linear default (U[-1/sqrt(in), 1/sqrt(in)])."""
    k1, k2, k3, k4 = jax.random.split(key, 4)
    bound1 = 1.0 / jnp.sqrt(state_dim)
    bound2 = 1.0 / jnp.sqrt(hidden_dim)
    w1 = jax.random.uniform(k1, (state_dim, hidden_dim), jnp.float32, -bound1, bound1)
    b1 = jax.random.uniform(k2, (1, hidden_dim), jnp.float32, -bound1, bound1)
    w2 = jax.random.uniform(k3, (hidden_dim, action_dim), jnp.float32, -bound2, bound2)
    b2 = jax.random.uniform(k4, (1, action_dim), jnp.float32, -bound2, bound2)
    return w1, b1, w2, b2


if __name__ == "__main__":
    # CartPole-style REINFORCE policy evaluated on a rollout batch of states;
    # batch=300 exercises both batch tiling (TB=128) and batch padding (->384).
    batch, state_dim, hidden_dim, action_dim = 300, 4, 32, 2

    key = jax.random.PRNGKey(0)
    k_x, k_p = jax.random.split(key)
    x = jax.random.normal(k_x, (batch, state_dim), jnp.float32)
    w1, b1, w2, b2 = init_params(k_p, state_dim, hidden_dim, action_dim)

    probs = policy_net_forward(x, w1, b1, w2, b2)
    probs = jax.block_until_ready(probs)

    # Reference check in plain JAX (same math as the PyTorch forward).
    h_ref = jnp.maximum(x @ w1 + b1, 0.0)
    probs_ref = jax.nn.softmax(h_ref @ w2 + b2, axis=1)

    assert probs.shape == (batch, action_dim)
    assert jnp.allclose(probs, probs_ref, atol=1e-5, rtol=1e-5)
    assert jnp.allclose(jnp.sum(probs, axis=1), 1.0, atol=1e-5)

    print("KERNEL_OK")
</pallas_src>

<mosaic_0001>
module attributes {stable_mosaic.version = 11 : i64} {
  func.func @policy_net_kernel(%arg0: i32, %arg1: memref<128x4xf32, #tpu.memory_space<vmem>>, %arg2: memref<4x32xf32, #tpu.memory_space<vmem>>, %arg3: memref<1x32xf32, #tpu.memory_space<vmem>>, %arg4: memref<32x128xf32, #tpu.memory_space<vmem>>, %arg5: memref<1x128xf32, #tpu.memory_space<vmem>>, %arg6: memref<128x128xf32, #tpu.memory_space<vmem>>) attributes {dimension_semantics = [#tpu.dimension_semantics<parallel>], iteration_bounds = array<i64: 3>, scalar_prefetch = 0 : i64, scratch_operands = 0 : i64, tpu.core_type = #tpu.core_type<tc>, window_params = [{transform_indices = @transform_0, window_bounds = array<i64: 128, 4>}, {pipeline_mode = #tpu.pipeline_mode<synchronous>, transform_indices = @transform_1, window_bounds = array<i64: 4, 32>}, {pipeline_mode = #tpu.pipeline_mode<synchronous>, transform_indices = @transform_2, window_bounds = array<i64: 1, 32>}, {pipeline_mode = #tpu.pipeline_mode<synchronous>, transform_indices = @transform_3, window_bounds = array<i64: 32, 128>}, {pipeline_mode = #tpu.pipeline_mode<synchronous>, transform_indices = @transform_4, window_bounds = array<i64: 1, 128>}, {transform_indices = @transform_5, window_bounds = array<i64: 128, 128>}]} {
    %c0 = arith.constant 0 : index
    %c0_0 = arith.constant 0 : index
    %0 = vector.load %arg1[%c0, %c0_0] : memref<128x4xf32, #tpu.memory_space<vmem>>, vector<128x4xf32>
    %c0_1 = arith.constant 0 : index
    %c0_2 = arith.constant 0 : index
    %1 = vector.load %arg2[%c0_1, %c0_2] : memref<4x32xf32, #tpu.memory_space<vmem>>, vector<4x32xf32>
    %2 = vector.extract_strided_slice %0 {offsets = [0, 0], sizes = [128, 1], strides = [1, 1]} : vector<128x4xf32> to vector<128x1xf32>
    %3 = vector.extract_strided_slice %1 {offsets = [0, 0], sizes = [1, 32], strides = [1, 1]} : vector<4x32xf32> to vector<1x32xf32>
    %4 = vector.broadcast %2 : vector<128x1xf32> to vector<128x32xf32>
    %5 = vector.broadcast %3 : vector<1x32xf32> to vector<128x32xf32>
    %6 = arith.mulf %4, %5 : vector<128x32xf32>
    %7 = vector.extract_strided_slice %0 {offsets = [0, 1], sizes = [128, 1], strides = [1, 1]} : vector<128x4xf32> to vector<128x1xf32>
    %8 = vector.extract_strided_slice %1 {offsets = [1, 0], sizes = [1, 32], strides = [1, 1]} : vector<4x32xf32> to vector<1x32xf32>
    %9 = vector.broadcast %7 : vector<128x1xf32> to vector<128x32xf32>
    %10 = vector.broadcast %8 : vector<1x32xf32> to vector<128x32xf32>
    %11 = arith.mulf %9, %10 : vector<128x32xf32>
    %12 = arith.addf %6, %11 : vector<128x32xf32>
    %13 = vector.extract_strided_slice %0 {offsets = [0, 2], sizes = [128, 1], strides = [1, 1]} : vector<128x4xf32> to vector<128x1xf32>
    %14 = vector.extract_strided_slice %1 {offsets = [2, 0], sizes = [1, 32], strides = [1, 1]} : vector<4x32xf32> to vector<1x32xf32>
    %15 = vector.broadcast %13 : vector<128x1xf32> to vector<128x32xf32>
    %16 = vector.broadcast %14 : vector<1x32xf32> to vector<128x32xf32>
    %17 = arith.mulf %15, %16 : vector<128x32xf32>
    %18 = arith.addf %12, %17 : vector<128x32xf32>
    %19 = vector.extract_strided_slice %0 {offsets = [0, 3], sizes = [128, 1], strides = [1, 1]} : vector<128x4xf32> to vector<128x1xf32>
    %20 = vector.extract_strided_slice %1 {offsets = [3, 0], sizes = [1, 32], strides = [1, 1]} : vector<4x32xf32> to vector<1x32xf32>
    %21 = vector.broadcast %19 : vector<128x1xf32> to vector<128x32xf32>
    %22 = vector.broadcast %20 : vector<1x32xf32> to vector<128x32xf32>
    %23 = arith.mulf %21, %22 : vector<128x32xf32>
    %24 = arith.addf %18, %23 : vector<128x32xf32>
    %c0_3 = arith.constant 0 : index
    %c0_4 = arith.constant 0 : index
    %25 = vector.load %arg3[%c0_3, %c0_4] : memref<1x32xf32, #tpu.memory_space<vmem>>, vector<1x32xf32>
    %26 = vector.broadcast %25 : vector<1x32xf32> to vector<128x32xf32>
    %27 = arith.addf %24, %26 : vector<128x32xf32>
    %cst = arith.constant 0.000000e+00 : f32
    %28 = vector.broadcast %cst : f32 to vector<128x32xf32>
    %29 = arith.maximumf %27, %28 : vector<128x32xf32>
    %c0_5 = arith.constant 0 : index
    %c0_6 = arith.constant 0 : index
    %30 = vector.load %arg4[%c0_5, %c0_6] : memref<32x128xf32, #tpu.memory_space<vmem>>, vector<32x128xf32>
    %cst_7 = arith.constant dense<0.000000e+00> : vector<128x128xf32>
    %31 = tpu.matmul %29, %30, %cst_7 {dimension_numbers = #tpu.dot_dimension_numbers<[1], [0], [0], [1], [0, 0, 1, 1], [], []>} : vector<128x32xf32>, vector<32x128xf32>, vector<128x128xf32> -> vector<128x128xf32>
    %c0_8 = arith.constant 0 : index
    %c0_9 = arith.constant 0 : index
    %32 = vector.load %arg5[%c0_8, %c0_9] : memref<1x128xf32, #tpu.memory_space<vmem>>, vector<1x128xf32>
    %33 = vector.broadcast %32 : vector<1x128xf32> to vector<128x128xf32>
    %34 = arith.addf %31, %33 : vector<128x128xf32>
    %35 = tpu.iota {dimensions = array<i32: 1>} : vector<128x128xi32>
    %c2_i32 = arith.constant 2 : i32
    %36 = vector.broadcast %c2_i32 : i32 to vector<128x128xi32>
    %37 = arith.cmpi slt, %35, %36 : vector<128x128xi32>
    %cst_10 = arith.constant -1.000000e+30 : f32
    %38 = vector.broadcast %cst_10 : f32 to vector<128x128xf32>
    %39 = arith.select %37, %34, %38 : vector<128x128xi1>, vector<128x128xf32>
    %cst_11 = arith.constant dense<0xFF800000> : vector<128xf32>
    %40 = vector.multi_reduction <maximumf>, %39, %cst_11 [1] : vector<128x128xf32> to vector<128xf32>
    %41 = vector.shape_cast %40 : vector<128xf32> to vector<128x1xf32>
    %42 = vector.broadcast %41 : vector<128x1xf32> to vector<128x128xf32>
    %43 = arith.subf %39, %42 : vector<128x128xf32>
    %44 = math.exp %43 : vector<128x128xf32>
    %cst_12 = arith.constant 0.000000e+00 : f32
    %45 = vector.broadcast %cst_12 : f32 to vector<128x128xf32>
    %46 = arith.select %37, %44, %45 : vector<128x128xi1>, vector<128x128xf32>
    %cst_13 = arith.constant dense<0.000000e+00> : vector<128xf32>
    %47 = vector.multi_reduction <add>, %46, %cst_13 [1] : vector<128x128xf32> to vector<128xf32>
    %48 = vector.shape_cast %47 : vector<128xf32> to vector<128x1xf32>
    %49 = vector.broadcast %48 : vector<128x1xf32> to vector<128x128xf32>
    %50 = arith.divf %46, %49 : vector<128x128xf32>
    %c0_14 = arith.constant 0 : index
    %c0_15 = arith.constant 0 : index
    %51 = vector.load %arg6[%c0_14, %c0_15] : memref<128x128xf32, #tpu.memory_space<vmem>>, vector<128x128xf32>
    tpu.vector_store %arg6[%c0_14, %c0_15], %50 {strides = array<i32>} : memref<128x128xf32, #tpu.memory_space<vmem>>, vector<128x128xf32>,
    return
  }
  func.func @transform_0(%arg0: i32) -> (i32, i32) {
    %c0_i32 = arith.constant 0 : i32
    %c0_i32_0 = arith.constant 0 : i32
    return %arg0, %c0_i32 : i32, i32
  }
  func.func @transform_1(%arg0: i32) -> (i32, i32) {
    %c0_i32 = arith.constant 0 : i32
    %c0_i32_0 = arith.constant 0 : i32
    %c0_i32_1 = arith.constant 0 : i32
    return %c0_i32, %c0_i32_0 : i32, i32
  }
  func.func @transform_2(%arg0: i32) -> (i32, i32) {
    %c0_i32 = arith.constant 0 : i32
    %c0_i32_0 = arith.constant 0 : i32
    %c0_i32_1 = arith.constant 0 : i32
    return %c0_i32, %c0_i32_0 : i32, i32
  }
  func.func @transform_3(%arg0: i32) -> (i32, i32) {
    %c0_i32 = arith.constant 0 : i32
    %c0_i32_0 = arith.constant 0 : i32
    %c0_i32_1 = arith.constant 0 : i32
    return %c0_i32, %c0_i32_0 : i32, i32
  }
  func.func @transform_4(%arg0: i32) -> (i32, i32) {
    %c0_i32 = arith.constant 0 : i32
    %c0_i32_0 = arith.constant 0 : i32
    %c0_i32_1 = arith.constant 0 : i32
    return %c0_i32, %c0_i32_0 : i32, i32
  }
  func.func @transform_5(%arg0: i32) -> (i32, i32) {
    %c0_i32 = arith.constant 0 : i32
    %c0_i32_0 = arith.constant 0 : i32
    return %arg0, %c0_i32 : i32, i32
  }
}

</mosaic_0001>

<bundles_post_ra>
// kernel: tpu_custom_call.1
= control target key start
LH: loop header
LB: loop body
LE: loop exit
PB: predicated region body
PF: predicated region fallthrough
CT: control target
= control target key end

     0   :  { %10 = vsyncpa [#allocation3], 0  ;;  %s2097_s0 = inlined_call_operand.vmem [shape: f32[384,4], index: 0, kind: input, shape index: {}]   ;;  %s2098_s1 = inlined_call_operand.vmem [shape: f32[4,32], index: 1, kind: input, shape index: {}]   ;;  %s2099_s2 = inlined_call_operand.vmem [shape: f32[1,32], index: 2, kind: input, shape index: {}]   ;;  %s2100_s3 = inlined_call_operand.vmem [shape: f32[32,128], index: 3, kind: input, shape index: {}]   ;;  %s2101_s4 = inlined_call_operand.vmem [shape: f32[1,128], index: 4, kind: input, shape index: {}]   ;;  %s2102_s5 = inlined_call_operand.hbm [shape: f32[384,128], index: 5, kind: output, shape index: {}]  }
   0x1   :  { %12 = vsyncpa [#allocation3 + $0x1], 0  ;;  %s1488_s18 = smov 0   ;;  %s1490_s19 = smov 0  }
   0x2   :  { %s1492_s20 = smov 0   ;;  %s1494_s21 = smov 0  }
   0x3 LB: > { %s1509_s22 = sadd.s32 4294967295, %s1449_s21   ;;  %s1158_s23 = sadd.s32 4294967294, %s1449_s21   ;;  %s1449_s21 = sphi %s1494_s21, %s2108_s21   ;;  %s1445_s20 = sphi %s1492_s20, %s2107_s20   ;;  %s1441_s19 = sphi %s1490_s19, %s2106_s19   ;;  %s1437_s18 = sphi %s1488_s18, %s2105_s18  }
   0x4   : > { %s1513_s24 = sadd.s32 1, %s1449_s21   ;;  %s135_s25 = sadd.s32 1, %s1445_s20 }
   0x5   : > { %s132_s26 = ssub.s32 %s1449_s21, %s1513_s24  ;;  %p145_p0 = scmp.ne.s32.totalorder %s1445_s20, %s1441_s19 }
   0x6   : > { %p133_p1 = scmp.eq.s32.totalorder %s132_s26, 0  ;;  %p146_p2 = scmp.eq.s32.totalorder %s1509_s22, 2 }
   0x7   : > { %p151_p3 = scmp.ne.s32.totalorder %s1441_s19, %s1437_s18  ;;  %p152_p4 = scmp.eq.s32.totalorder %s1158_s23, 2 }
   0x8   : > { %s1524_s27 = scalar_select %p133_p1, %s1445_s20, %s135_s25  }
   0x9   : > { %p1526_p5 = por %p146_p2, %p145_p0  ;;  %p1530_p6 = por %p152_p4, %p151_p3 }
   0xa   : > { %p1161_p7 = scmp.ge.s32.totalorder %s1449_s21, 1  ;;  %p191_p8 = scmp.lt.s32.totalorder %s1449_s21, 4 }
   0xc   : > { %p192_p9 = pnand %p1161_p7, %p191_p8 }
   0xd   : > { %s1163_s30 = sshll.u32 (!%p192_p9), %s1509_s22, 4  ;;  %s216_s8 = sand.u32 (!%p192_p9), 1, %s1441_s19  }
   0xe   : > { %195 = sbr.rel (%p192_p9) target bundleno = 863 (0x35f), region = 40  ;;  %p220_p10 = scmp.lt.s32.totalorder (!%p192_p9), %s1163_s30, 47 }
   0xf   : > { %s1188_s11 = sshll.u32 (!%p192_p9), %s1509_s22, 11  ;;  %s2057_s22 = scalar_lea.sflag (!%p192_p9), [#allocation3], %s216_s8 }
  0x10   : > { %s2048_s15 = scalar_lea.hbm (!%p192_p9), %s2102_s5, %s1188_s11  ;;  %s1455_s17 = smov (!%p192_p9), [#allocation2]  }
  0x11   : > { %s1393_s23 = sshll.u32 (!%p192_p9), %s1455_s17, 4  ;;  %s1394_s23 = int_to_ptr.vmem [resolvable:$false] %s1393_s23 }
  0x12   : > { %s1395_s25 = scalar_lea.vmem (!%p192_p9), %s1394_s23, 4096 }
  0x13   : > { %v1451_v0 = vmov 3   ;;  %v1452_v1 = vmov 1   ;;  %s2110_s30 = smov (!%p220_p10, %s1163_s30), 47  ;;  %v1453_v7 = vmov 0   ;;  %v1454_v9 = vmov 2   ;;  %v685_v17 = vld [vmem:[%s2100_s3 + $0x18] sm:$0xff] }
  0x14   : > { %1307 = vset.pattern.permute.xlu0 %v1451_v0  ;;  %1294 = vset.pattern.permute.xlu1 %v1452_v1  ;;  %s1164_s6 = sshll.u32 %s2110_s30, 3  ;;  %v684_v18 = vld [vmem:[%s2100_s3 + $0x10] sm:$0xff]  ;;  %v683_v20 = vld [vmem:[%s2100_s3 + $0x8] sm:$0xff]  ;;  %v682_v21 = vld [vmem:[%s2100_s3] sm:$0xff]  ;;  %v323_v35 = vlaneseq  ;;  %vm693_vm0 = vcmask 261120  }
  0x15   : > { %s1542_s9 = scalar_lea.vmem %s2097_s0, %s1164_s6  ;;  %1209 = vmatprep.subr.mxu0 %v685_v17  ;;  %1241 = vmatprep.subr.mxu1 %v685_v17  ;;  %v242_v44 = vld [vmem:[%s2098_s1] sm:$0xf] }
  0x16   : > { %v1545_v2 = vld [vmem:[%s1542_s9 + $0x10] sm:$0xff]  ;;  %v226_v3 = vld [vmem:[%s1542_s9] sm:$0xff]  ;;  %v1550_v4 = vld [vmem:[%s1542_s9 + $0x18] sm:$0xff]  ;;  %1210 = vmatpush3.msra.mxu0 %v685_v17  ;;  %1245 = vmatpush3.msra.mxu1 %v685_v17  ;;  %v324_v38 = vshrl.u32 %v323_v35, 7 }
  0x17   : > { %552 = vperm.xlu0 %1307, %v1545_v2   ;;  %344 = vperm.xlu1 %1294, %v226_v3   ;;  %v1553_v5 = vld [vmem:[%s1542_s9 + $0x40] sm:$0xff]  ;;  %v1558_v6 = vld [vmem:[%s1542_s9 + $0x48] sm:$0xff]  ;;  %v1576_v11 = vld [vmem:[%s1542_s9 + $0x50] sm:$0xff] }
  0x18   : > { %v227_v8 = vld [vmem:[%s1542_s9 + $0x8] sm:$0xff]  ;;  %v1571_v10 = vld [vmem:[%s1542_s9 + $0x60] sm:$0xff]  ;;  %v1585_v13 = vld [vmem:[%s1542_s9 + $0x30] sm:$0xff]  ;;  %1211 = vmatprep.subr.mxu0 %v684_v18  ;;  %1242 = vmatprep.subr.mxu1 %v684_v18  ;;  %v325_v40 = vsub.s32 0, %v324_v38  ;;  %v409_v42 = vsub.s32 1, %v324_v38  ;;  %v509_v43 = vsub.s32 2, %v324_v38 }
  0x19   : > { %v1579_v12 = vld [vmem:[%s1542_s9 + $0x68] sm:$0xff]  ;;  %v1591_v14 = vld [vmem:[%s1542_s9 + $0x38] sm:$0xff]  ;;  %v1602_v16 = vld [vmem:[%s1542_s9 + $0x70] sm:$0xff]  ;;  %1212 = vmatpush3.msra.mxu0 %v684_v18  ;;  %1246 = vmatpush3.msra.mxu1 %v684_v18  ;;  %v609_v49 = vsub.s32 3, %v324_v38 }
  0x1a   : > { %v237_v15 = vld [vmem:[%s1542_s9 + $0x58] sm:$0xff]  ;;  %1213 = vmatprep.subr.mxu0 %v683_v20  ;;  %1243 = vmatprep.subr.mxu1 %v683_v20  ;;  %v230_v22 = vld [vmem:[%s1542_s9 + $0x20] sm:$0xff]  ;;  %v231_v23 = vld [vmem:[%s1542_s9 + $0x28] sm:$0xff]  ;;  %v1682_v46 = vrot.slane %v242_v44, %v325_v40  ;;  %v1686_v48 = vrot.slane %v242_v44, %v409_v42  ;;  %v1688_v50 = vrot.slane %v242_v44, %v509_v43 }
  0x1b   : > { %556 = vperm.xlu0 %1307, %v1550_v4   ;;  %376 = vperm.xlu1 %1294, %v1553_v5   ;;  %v1613_v19 = vld [vmem:[%s1542_s9 + $0x78] sm:$0xff]  ;;  %v1695_v55 = vrot.slane %v242_v44, %v609_v49  ;;  %v1706_v62 = vld [vmem:[%s2099_s2] ss:$0 sm:$0xff]  ;;  %s1162_s9 = sshll.u32 %s216_s8, 7 }
  0x1c   : > { %1214 = vmatpush3.msra.mxu0 %v683_v20  ;;  %1247 = vmatpush3.msra.mxu1 %v683_v20  ;;  %s2013_s10 = scalar_lea.vmem [#allocation2], %s1162_s9 }
  0x1d   : > { %1215 = vmatprep.subr.mxu0 %v682_v21  ;;  %1244 = vmatprep.subr.mxu1 %v682_v21  ;;  %s1096_s12 = sshll.u32 %s2013_s10, 4  ;;  %s2050_s12 = int_to_ptr.vmem [resolvable:$true] %s1096_s12 }
  0x1e   : > { %1216 = vmatpush3.msra.mxu0 %v682_v21  ;;  %1248 = vmatpush3.msra.mxu1 %v682_v21  ;;  %s1389_s16 = scalar_lea.vmem %s2050_s12, 2048  ;;  %p1396_p0 = scmp.lt.s32.totalorder %s2050_s12, %s1394_s23 }
  0x1f   : > { %1311 = vset.pattern.permute.xlu0 %v1453_v7  ;;  %1295 = vset.pattern.permute.xlu1 %v1453_v7  ;;  %p1390_p11 = scmp.ne.s32.totalorder %s2050_s12, %s1389_s16  ;;  %p1397_p1 = scmp.lt.s32.totalorder %s1395_s25, %s1389_s16 }
  0x20   : > { %245 = vperm.xlu0 %1311, %v226_v3   ;;  %290 = vperm.xlu1 %1295, %v1558_v6  }
  0x21   : > { %p1391_p12 = pnand %p1390_p11, %p1526_p5  ;;  %p1398_p2 = por %p1397_p1, %p1396_p0 }
  0x23   : > { %p1392_p13 = pneg %p1391_p12 }
  0x24   : > { %285 = vperm.xlu0 %1311, %v1553_v5   ;;  %1296 = vset.pattern.permute.xlu1 %v1452_v1 }
  0x25   : > { %380 = vperm.xlu1 %1296, %v1558_v6   ;;  %p1399_p3 = pnand %p1398_p2, %p1392_p13 }
  0x28   : > { %250 = vperm.xlu0 %1311, %v227_v8  }
  0x29   : > { %1297 = vset.pattern.permute.xlu1 %v1454_v9 }
  0x2a   : > { %444 = vperm.xlu1 %1297, %v226_v3  }
  0x2c   : > { %255 = vperm.xlu0 %1311, %v1545_v2  }
  0x2e   : > { %448 = vperm.xlu1 %1297, %v227_v8  }
  0x30   : > { %260 = vperm.xlu0 %1311, %v1550_v4  }
  0x32   : > { %480 = vperm.xlu1 %1297, %v1558_v6  }
  0x34   : > { %305 = vperm.xlu0 %1311, %v1571_v10  }
  0x36   : > { %1298 = vset.pattern.permute.xlu1 %v1453_v7 }
  0x37   : > { %295 = vperm.xlu1 %1298, %v1576_v11  }
  0x38   : > { %310 = vperm.xlu0 %1311, %v1579_v12  }
  0x3b   : > { %1299 = vset.pattern.permute.xlu1 %v1452_v1 }
  0x3c   : > { %275 = vperm.xlu0 %1311, %v1585_v13   ;;  %352 = vperm.xlu1 %1299, %v1545_v2  }
  0x40   : > { %280 = vperm.xlu0 %1311, %v1591_v14   ;;  %1300 = vset.pattern.permute.xlu1 %v1451_v0 }
  0x41   : > { %544 = vperm.xlu1 %1300, %v226_v3  }
  0x44   : > { %1317 = vset.pattern.permute.xlu0 %v1452_v1 }
  0x45   : > { %348 = vperm.xlu0 %1317, %v227_v8   ;;  %576 = vperm.xlu1 %1300, %v1553_v5  }
  0x49   : > { %384 = vperm.xlu0 %1317, %v1576_v11   ;;  %1301 = vset.pattern.permute.xlu1 %v1453_v7 }
  0x4a   : > { %300 = vperm.xlu1 %1301, %v237_v15  }
  0x4d   : > { %388 = vperm.xlu0 %1317, %v237_v15  }
  0x4e   : > { %1302 = vset.pattern.permute.xlu1 %v1452_v1 }
  0x4f   : > { %356 = vperm.xlu1 %1302, %v1550_v4  }
  0x51   : > { %400 = vperm.xlu0 %1317, %v1602_v16  }
  0x53   : > { %1303 = vset.pattern.permute.xlu1 %v1451_v0 }
  0x54   : > { %548 = vperm.xlu1 %1303, %v227_v8  }
  0x55   : > { %404 = vperm.xlu0 %1317, %v1613_v19  }
  0x58   : > { %580 = vperm.xlu1 %1303, %v1558_v6  }
  0x59   : > { %1320 = vset.pattern.permute.xlu0 %v1454_v9 }
  0x5a   : > { %476 = vperm.xlu0 %1320, %v1553_v5  }
  0x5c   : > { %1304 = vset.pattern.permute.xlu1 %v1454_v9 }
  0x5d   : > { %484 = vperm.xlu1 %1304, %v1576_v11  }
  0x5e   : > { %452 = vperm.xlu0 %1320, %v1545_v2  }
  0x61   : > { %456 = vperm.xlu1 %1304, %v1550_v4  }
  0x62   : > { %488 = vperm.xlu0 %1320, %v237_v15  }
  0x65   : > { %1305 = vset.pattern.permute.xlu1 %v1453_v7 }
  0x66   : > { %265 = vperm.xlu1 %1305, %v230_v22   ;;  %492 = vperm.xlu0 %1320, %v1571_v10  }
  0x6a   : > { %1306 = vset.pattern.permute.xlu1 %v1452_v1  ;;  %468 = vperm.xlu0 %1320, %v1585_v13  }
  0x6b   : > { %360 = vperm.xlu1 %1306, %v230_v22  }
  0x6e   : > { %504 = vperm.xlu0 %1320, %v1613_v19  }
  0x6f   : > { %392 = vperm.xlu1 %1306, %v1571_v10  }
  0x72   : > { %1324 = vset.pattern.permute.xlu0 %v1451_v0 }
  0x73   : > { %1308 = vset.pattern.permute.xlu1 %v1451_v0  ;;  %600 = vperm.xlu0 %1324, %v1602_v16  }
  0x74   : > { %584 = vperm.xlu1 %1308, %v1576_v11  }
  0x78   : > { %1309 = vset.pattern.permute.xlu1 %v1453_v7 }
  0x79   : > { %270 = vperm.xlu1 %1309, %v231_v23  }
  0x7d   : > { %1310 = vset.pattern.permute.xlu1 %v1452_v1 }
  0x7e   : > { %364 = vperm.xlu1 %1310, %v231_v23  }
  0x82   : > { %396 = vperm.xlu1 %1310, %v1579_v12  }
  0x86   : > { %1312 = vset.pattern.permute.xlu1 %v1451_v0 }
  0x87   : > { %588 = vperm.xlu1 %1312, %v237_v15  }
  0x8b   : > { %1313 = vset.pattern.permute.xlu1 %v1454_v9 }
  0x8c   : > { %460 = vperm.xlu1 %1313, %v230_v22  }
  0x90   : > { %464 = vperm.xlu1 %1313, %v231_v23  }
  0x92   : > { %v345_v24 = vpop.permute.xlu1 %344  ;;  %v1647_v25 = vpop.permute.xlu0 %552 }
  0x93   : > { %v411_v54 = vmul.f32 %v1686_v48, %v345_v24 }
  0x94   : > { %496 = vperm.xlu1 %1313, %v1579_v12  }
  0x96   : > { %v1650_v26 = vpop.permute.xlu1 %376  ;;  %v1652_v27 = vpop.permute.xlu0 %556 }
  0x98   : > { %1314 = vset.pattern.permute.xlu1 %v1453_v7 }
  0x99   : > { %315 = vperm.xlu1 %1314, %v1602_v16  }
  0x9b   : > { %v246_v28 = vpop.permute.xlu0 %245  ;;  %v1656_v29 = vpop.permute.xlu1 %290 }
  0x9c   : > { %v327_v51 = vmul.f32 %v1682_v46, %v246_v28 }
  0x9d   : > { %1315 = vset.pattern.permute.xlu1 %v1452_v1 }
  0x9e   : > { %368 = vperm.xlu1 %1315, %v1585_v13   ;;  %v427_v57 = vadd.f32 %v411_v54, %v327_v51 }
  0x9f   : > { %v1660_v30 = vpop.permute.xlu0 %285 }
  0xa0   : > { %v1662_v31 = vpop.permute.xlu1 %380 }
  0xa2   : > { %1316 = vset.pattern.permute.xlu1 %v1451_v0 }
  0xa3   : > { %560 = vperm.xlu1 %1316, %v230_v22   ;;  %v251_v32 = vpop.permute.xlu0 %250 }
  0xa5   : > { %v445_v33 = vpop.permute.xlu1 %444 }
  0xa6   : > { %v511_v56 = vmul.f32 %v1688_v50, %v445_v33 }
  0xa7   : > { %592 = vperm.xlu1 %1316, %v1571_v10   ;;  %v1666_v34 = vpop.permute.xlu0 %255 }
  0xa8   : > { %v527_v60 = vadd.f32 %v511_v56, %v427_v57 }
  0xa9   : > { %v449_v36 = vpop.permute.xlu1 %448 }
  0xaa   : > { %v512_v15 = vmul.f32 %v1688_v50, %v449_v36 }
  0xab   : > { %1318 = vset.pattern.permute.xlu1 %v1453_v7  ;;  %v1669_v37 = vpop.permute.xlu0 %260  ;;  %v328_v7 = vmul.f32 %v1682_v46, %v251_v32 }
  0xac   : > { %320 = vperm.xlu1 %1318, %v1613_v19   ;;  %v330_v44 = vmul.f32 %v1682_v46, %v1669_v37 }
  0xad   : > { %v481_v39 = vpop.permute.xlu1 %480 }
  0xae   : > { %v520_v21 = vmul.f32 %v1688_v50, %v481_v39 }
  0xaf   : > { %v1673_v41 = vpop.permute.xlu0 %305 }
  0xb0   : > { %1319 = vset.pattern.permute.xlu1 %v1452_v1 }
  0xb1   : > { %372 = vperm.xlu1 %1319, %v1591_v14  }
  0xb2   : > { %v1680_v45 = vpop.permute.xlu1 %295 }
  0xb3   : > { %v1684_v47 = vpop.permute.xlu0 %310 }
  0xb5   : > { %1321 = vset.pattern.permute.xlu1 %v1451_v0 }
  0xb6   : > { %564 = vperm.xlu1 %1321, %v231_v23   ;;  %v419_v23 = vmul.f32 %v1686_v48, %v1650_v26 }
  0xb7   : > { %v353_v52 = vpop.permute.xlu1 %352  ;;  %v1692_v53 = vpop.permute.xlu0 %275 }
  0xba   : > { %596 = vperm.xlu1 %1321, %v1579_v12  }
  0xbb   : > { %v1699_v58 = vpop.permute.xlu0 %280 }
  0xbc   : > { %v545_v59 = vpop.permute.xlu1 %544 }
  0xbd   : > { %v611_v61 = vmul.f32 %v1695_v55, %v545_v59 }
  0xbe   : > { %1322 = vset.pattern.permute.xlu1 %v1454_v9 }
  0xbf   : > { %v627_v63 = vadd.f32 %v611_v61, %v527_v60  ;;  %500 = vperm.xlu1 %1322, %v1602_v16   ;;  %v420_v16 = vmul.f32 %v1686_v48, %v1662_v31 }
  0xc0   : > { %v349_v1 = vpop.permute.xlu0 %348  ;;  %v577_v2 = vpop.permute.xlu1 %576 }
  0xc1   : > { %v650_v3 = vadd.f32 %v1706_v62, %v627_v63  ;;  %v412_v8 = vmul.f32 %v1686_v48, %v349_v1  ;;  %v619_v26 = vmul.f32 %v1695_v55, %v577_v2  ;;  %v614_v63 = vmul.f32 %v1695_v55, %v1652_v27 }
  0xc3   : > { %472 = vperm.xlu1 %1322, %v1591_v14   ;;  %v666_v4 = vmax.f32 %v650_v3, 0.0  ;;  %v428_v11 = vadd.f32 %v412_v8, %v328_v7 }
  0xc4   : > { %v1711_v5 = vpop.permute.xlu0 %384 }
  0xc5   : > { %1217 = vmatprep.mubr.msk.f32.mxu0 %vm693_vm0, %v666_v4  ;;  %v1714_v6 = vpop.permute.xlu1 %300  ;;  %v528_v17 = vadd.f32 %v512_v15, %v428_v11 }
  0xc7   : > { %1323 = vset.pattern.permute.xlu1 %v1451_v0 }
  0xc8   : > { %v1719_v9 = vpop.permute.xlu0 %388  ;;  %568 = vperm.xlu1 %1323, %v1585_v13   ;;  %v336_v13 = vmul.f32 %v1682_v46, %v1656_v29  ;;  %v329_v29 = vmul.f32 %v1682_v46, %v1666_v34  ;;  %v613_v34 = vmul.f32 %v1695_v55, %v1647_v25 }
  0xca   : > { %v357_v10 = vpop.permute.xlu1 %356  ;;  %v436_v24 = vadd.f32 %v420_v16, %v336_v13 }
  0xcb   : > { %v414_v49 = vmul.f32 %v1686_v48, %v357_v10 }
  0xcc   : > { %572 = vperm.xlu1 %1323, %v1591_v14   ;;  %v1723_v12 = vpop.permute.xlu0 %400  ;;  %v335_v14 = vmul.f32 %v1682_v46, %v1660_v30  ;;  %v536_v33 = vadd.f32 %v520_v21, %v436_v24  ;;  %v413_v30 = vmul.f32 %v1686_v48, %v353_v52 }
  0xcd   : > { %v430_v37 = vadd.f32 %v414_v49, %v330_v44 }
  0xce   : > { %v435_v32 = vadd.f32 %v419_v23, %v335_v14  ;;  %v429_v52 = vadd.f32 %v413_v30, %v329_v29 }
  0xcf   : > { %v549_v0 = vpop.permute.xlu1 %548 }
  0xd0   : > { %v612_v18 = vmul.f32 %v1695_v55, %v549_v0  ;;  %604 = vperm.xlu1 %1323, %v1613_v19   ;;  %v1730_v20 = vpop.permute.xlu0 %404  ;;  %v421_v0 = vmul.f32 %v1686_v48, %v1711_v5 }
  0xd2   : > { %v628_v22 = vadd.f32 %v612_v18, %v528_v17  ;;  %v337_v18 = vmul.f32 %v1682_v46, %v1680_v45 }
  0xd3   : > { %v581_v28 = vpop.permute.xlu1 %580 }
  0xd4   : > { %v651_v31 = vadd.f32 %v1706_v62, %v628_v22  ;;  %v620_v19 = vmul.f32 %v1695_v55, %v581_v28  ;;  %v437_v14 = vadd.f32 %v421_v0, %v337_v18 }
  0xd5   : > { %v477_v36 = vpop.permute.xlu0 %476 }
  0xd6   : > { %v667_v38 = vmax.f32 %v651_v31, 0.0  ;;  %v519_v39 = vmul.f32 %v1688_v50, %v477_v36  ;;  %v636_v40 = vadd.f32 %v620_v19, %v536_v33  ;;  %v422_v33 = vmul.f32 %v1686_v48, %v1719_v9 }
  0xd7   : > { %v338_v36 = vmul.f32 %v1682_v46, %v1714_v6 }
  0xd8   : > { %v535_v42 = vadd.f32 %v519_v39, %v435_v32  ;;  %1218 = vmatmul.mubr.msk.f32.vlgmr.msra.gmra.mxu0 %vm693_vm0, %v667_v38  ;;  %v485_v43 = vpop.permute.xlu1 %484  ;;  %v659_v57 = vadd.f32 %v1706_v62, %v636_v40 }
  0xd9   : > { %v453_v51 = vpop.permute.xlu0 %452  ;;  %v521_v13 = vmul.f32 %v1688_v50, %v485_v43  ;;  %v438_v30 = vadd.f32 %v422_v33, %v338_v36 }
  0xda   : > { %v513_v54 = vmul.f32 %v1688_v50, %v453_v51  ;;  %v635_v56 = vadd.f32 %v619_v26, %v535_v42  ;;  %v675_v4 = vmax.f32 %v659_v57, 0.0 }
  0xdb   : > { %v537_v22 = vadd.f32 %v521_v13, %v437_v14 }
  0xdc   : > { %v529_v59 = vadd.f32 %v513_v54, %v429_v52  ;;  %v457_v60 = vpop.permute.xlu1 %456  ;;  %v658_v61 = vadd.f32 %v1706_v62, %v635_v56  ;;  %v339_v52 = vmul.f32 %v1682_v46, %v1673_v41 }
  0xdd   : > { %v514_v1 = vmul.f32 %v1688_v50, %v457_v60  ;;  %v489_v5 = vpop.permute.xlu0 %488 }
  0xde   : > { %v629_v2 = vadd.f32 %v613_v34, %v529_v59  ;;  %v674_v3 = vmax.f32 %v658_v61, 0.0  ;;  %v522_v29 = vmul.f32 %v1688_v50, %v489_v5 }
  0xdf   : > { %v530_v25 = vadd.f32 %v514_v1, %v430_v37 }
  0xe0   : > { %v652_v7 = vadd.f32 %v1706_v62, %v629_v2  ;;  %1229 = vmatprep.mubr.msk.f32.mxu1 %vm693_vm0, %v674_v3  ;;  %v538_v39 = vadd.f32 %v522_v29, %v438_v30 }
  0xe1   : > { %v630_v8 = vadd.f32 %v614_v63, %v530_v25  ;;  %1230 = vmatmul.mubr.msk.f32.vlgmr.msra.gmra.mxu1 %vm693_vm0, %v675_v4  ;;  %v266_v10 = vpop.permute.xlu1 %265  ;;  %v493_v59 = vpop.permute.xlu0 %492 }
  0xe2   : > { %v668_v11 = vmax.f32 %v652_v7, 0.0  ;;  %v331_v54 = vmul.f32 %v1682_v46, %v266_v10  ;;  %v523_v37 = vmul.f32 %v1688_v50, %v493_v59 }
  0xe3   : > { %v653_v15 = vadd.f32 %v1706_v62, %v630_v8 }
  0xe4   : > { %1220 = vmatprep.mubr.msk.f32.mxu0 %vm693_vm0, %v668_v11 }
  0xe5   : > { %v669_v27 = vmax.f32 %v653_v15, 0.0 }
  0xe6   : > { %v361_v16 = vpop.permute.xlu1 %360 }
  0xe7   : > { %1221 = vmatmul.mubr.msk.f32.gmra.mxu0 %vm693_vm0, %v669_v27  ;;  %v415_v34 = vmul.f32 %v1686_v48, %v361_v16 }
  0xe9   : > { %v431_v60 = vadd.f32 %v415_v34, %v331_v54 }
  0xea   : > { %v393_v17 = vpop.permute.xlu1 %392 }
  0xeb   : > { %v423_v56 = vmul.f32 %v1686_v48, %v393_v17 }
  0xed   : > { %v439_v63 = vadd.f32 %v423_v56, %v339_v52  ;;  %v333_v52 = vmul.f32 %v1682_v46, %v1692_v53 }
  0xef   : > { %v585_v21 = vpop.permute.xlu1 %584  ;;  %v539_v25 = vadd.f32 %v523_v37, %v439_v63 }
  0xf0   : > { %v621_v23 = vmul.f32 %v1695_v55, %v585_v21  ;;  %v469_v21 = vpop.permute.xlu0 %468 }
  0xf2   : > { %v637_v24 = vadd.f32 %v621_v23, %v537_v22  ;;  %v340_v23 = vmul.f32 %v1682_v46, %v1684_v47  ;;  %v425_v47 = vmul.f32 %v1686_v48, %v1723_v12 }
  0xf4   : > { %v660_v28 = vadd.f32 %v1706_v62, %v637_v24  ;;  %v271_v31 = vpop.permute.xlu1 %270 }
  0xf5   : > { %v332_v17 = vmul.f32 %v1682_v46, %v271_v31 }
  0xf6   : > { %v676_v19 = vmax.f32 %v660_v28, 0.0 }
  0xf8   : > { %1232 = vmatprep.mubr.msk.f32.mxu1 %vm693_vm0, %v676_v19 }
  0xf9   : > { %v365_v32 = vpop.permute.xlu1 %364 }
  0xfa   : > { %v416_v16 = vmul.f32 %v1686_v48, %v365_v32  ;;  %v505_v32 = vpop.permute.xlu0 %504 }
  0xfc   : > { %v432_v13 = vadd.f32 %v416_v16, %v332_v17 }
  0xfd   : > { %v397_v45 = vpop.permute.xlu1 %396 }
  0xfe   : > { %v424_v14 = vmul.f32 %v1686_v48, %v397_v45 }
 0x100   : > { %v440_v5 = vadd.f32 %v424_v14, %v340_v23  ;;  %v1166_v14 = vld [vmem:[%s2101_s4] ss:$0 sm:$0xff] }
 0x102   : > { %v589_v38 = vpop.permute.xlu1 %588 }
 0x103   : > { %v622_v40 = vmul.f32 %v1695_v55, %v589_v38 }
 0x105   : > { %v638_v26 = vadd.f32 %v622_v40, %v538_v39  ;;  %v601_v40 = vpop.permute.xlu0 %600 }
 0x107   : > { %v661_v42 = vadd.f32 %v1706_v62, %v638_v26  ;;  %v461_v43 = vpop.permute.xlu1 %460 }
 0x108   : > { %v515_v57 = vmul.f32 %v1688_v50, %v461_v43 }
 0x109   : > { %v677_v44 = vmax.f32 %v661_v42, 0.0 }
 0x10a   : > { %v531_v1 = vadd.f32 %v515_v57, %v431_v60  ;;  %v517_v57 = vmul.f32 %v1688_v50, %v469_v21 }
 0x10b   : > { %1233 = vmatmul.mubr.msk.f32.gmra.mxu1 %vm693_vm0, %v677_v44  ;;  %v465_v49 = vpop.permute.xlu1 %464 }
 0x10c   : > { %v516_v18 = vmul.f32 %v1688_v50, %v465_v49  ;;  %v625_v49 = vmul.f32 %v1695_v55, %v601_v40 }
 0x10e   : > { %v532_v24 = vadd.f32 %v516_v18, %v432_v13 }
 0x10f   : > { %v497_v9 = vpop.permute.xlu1 %496 }
 0x110   : > { %v524_v28 = vmul.f32 %v1688_v50, %v497_v9 }
 0x112   : > { %v540_v31 = vadd.f32 %v524_v28, %v440_v5 }
 0x114   : > { %v316_v51 = vpop.permute.xlu1 %315 }
 0x115   : > { %v341_v45 = vmul.f32 %v1682_v46, %v316_v51 }
 0x117   : > { %v441_v43 = vadd.f32 %v425_v47, %v341_v45 }
 0x119   : > { %v369_v6 = vpop.permute.xlu1 %368 }
 0x11a   : > { %v417_v9 = vmul.f32 %v1686_v48, %v369_v6 }
 0x11c   : > { %v433_v56 = vadd.f32 %v417_v9, %v333_v52 }
 0x11e   : > { %v561_v61 = vpop.permute.xlu1 %560  ;;  %v533_v37 = vadd.f32 %v517_v57, %v433_v56 }
 0x11f   : > { %v615_v2 = vmul.f32 %v1695_v55, %v561_v61  ;;  %v334_v61 = vmul.f32 %v1682_v46, %v1699_v58 }
 0x121   : > { %v631_v3 = vadd.f32 %v615_v2, %v531_v1 }
 0x122   : > { %v593_v4 = vpop.permute.xlu1 %592 }
 0x123   : > { %v654_v41 = vadd.f32 %v1706_v62, %v631_v3  ;;  %v623_v7 = vmul.f32 %v1695_v55, %v593_v4  ;;  %v426_v3 = vmul.f32 %v1686_v48, %v1730_v20 }
 0x125   : > { %v670_v8 = vmax.f32 %v654_v41, 0.0  ;;  %v639_v10 = vadd.f32 %v623_v7, %v539_v25 }
 0x127   : > { %v662_v11 = vadd.f32 %v1706_v62, %v639_v10  ;;  %1223 = vmatprep.mubr.msk.f32.mxu0 %vm693_vm0, %v670_v8  ;;  %v321_v15 = vpop.permute.xlu1 %320 }
 0x128   : > { %v342_v1 = vmul.f32 %v1682_v46, %v321_v15  ;;  %v526_v46 = vmul.f32 %v1688_v50, %v505_v32 }
 0x129   : > { %v678_v27 = vmax.f32 %v662_v11, 0.0 }
 0x12a   : > { %v442_v7 = vadd.f32 %v426_v3, %v342_v1 }
 0x12b   : > { %1235 = vmatprep.mubr.msk.f32.mxu1 %vm693_vm0, %v678_v27 }
 0x12c   : > { %v373_v0 = vpop.permute.xlu1 %372 }
 0x12d   : > { %v418_v60 = vmul.f32 %v1686_v48, %v373_v0  ;;  %v542_v0 = vadd.f32 %v526_v46, %v442_v7 }
 0x12f   : > { %v434_v4 = vadd.f32 %v418_v60, %v334_v61 }
 0x131   : > { %v565_v22 = vpop.permute.xlu1 %564 }
 0x132   : > { %v616_v19 = vmul.f32 %v1695_v55, %v565_v22 }
 0x134   : > { %v632_v33 = vadd.f32 %v616_v19, %v532_v24 }
 0x135   : > { %v597_v36 = vpop.permute.xlu1 %596 }
 0x136   : > { %v655_v29 = vadd.f32 %v1706_v62, %v632_v33  ;;  %v624_v30 = vmul.f32 %v1695_v55, %v597_v36 }
 0x138   : > { %v671_v38 = vmax.f32 %v655_v29, 0.0  ;;  %v640_v39 = vadd.f32 %v624_v30, %v540_v31 }
 0x13a   : > { %v663_v26 = vadd.f32 %v1706_v62, %v640_v39  ;;  %1224 = vmatmul.mubr.msk.f32.gmra.mxu0 %vm693_vm0, %v671_v38  ;;  %v501_v42 = vpop.permute.xlu1 %500 }
 0x13b   : > { %v525_v44 = vmul.f32 %v1688_v50, %v501_v42 }
 0x13c   : > { %v679_v34 = vmax.f32 %v663_v26, 0.0 }
 0x13d   : > { %v541_v51 = vadd.f32 %v525_v44, %v441_v43 }
 0x13e   : > { %1236 = vmatmul.mubr.msk.f32.gmra.mxu1 %vm693_vm0, %v679_v34  ;;  %v473_v12 = vpop.permute.xlu1 %472 }
 0x13f   : > { %v641_v54 = vadd.f32 %v625_v49, %v541_v51  ;;  %v518_v53 = vmul.f32 %v1688_v50, %v473_v12  ;;  %v1835_v50 = vand.u32 127, %v323_v35 }
 0x141   : > { %v664_v59 = vadd.f32 %v1706_v62, %v641_v54  ;;  %v534_v8 = vadd.f32 %v518_v53, %v434_v4  ;;  %vm889_vm1 = vcmp.lt.s32.totalorder %v1835_v50, 2 }
 0x143   : > { %v680_v6 = vmax.f32 %v664_v59, 0.0  ;;  %v569_v63 = vpop.permute.xlu1 %568 }
 0x144   : > { %v617_v2 = vmul.f32 %v1695_v55, %v569_v63 }
 0x145   : > { %1238 = vmatprep.mubr.msk.f32.mxu1 %vm693_vm0, %v680_v6 }
 0x146   : > { %v633_v25 = vadd.f32 %v617_v2, %v533_v37 }
 0x147   : > { %v573_v41 = vpop.permute.xlu1 %572 }
 0x148   : > { %v656_v58 = vadd.f32 %v1706_v62, %v633_v25  ;;  %v618_v10 = vmul.f32 %v1695_v55, %v573_v41 }
 0x14a   : > { %v672_v11 = vmax.f32 %v656_v58, 0.0  ;;  %v634_v15 = vadd.f32 %v618_v10, %v534_v8 }
 0x14b   : > { %v605_v27 = vpop.permute.xlu1 %604 }
 0x14c   : > { %v657_v16 = vadd.f32 %v1706_v62, %v634_v15  ;;  %v626_v17 = vmul.f32 %v1695_v55, %v605_v27  ;;  %1226 = vmatprep.mubr.msk.f32.mxu0 %vm693_vm0, %v672_v11 }
 0x14e   : > { %v673_v48 = vmax.f32 %v657_v16, 0.0  ;;  %v642_v20 = vadd.f32 %v626_v17, %v542_v0 }
 0x150   : > { %v665_v18 = vadd.f32 %v1706_v62, %v642_v20  ;;  %1227 = vmatmul.mubr.msk.f32.gmra.mxu0 %vm693_vm0, %v673_v48 }
 0x152   : > { %v681_v13 = vmax.f32 %v665_v18, 0.0 }
 0x154   : > { %1239 = vmatmul.mubr.msk.f32.gmra.mxu1 %vm693_vm0, %v681_v13 }
 0x198   : > { %v1219_v55 = vpop.f32.mrf.mxu0 }
 0x199   : > { %v814_v21 = vadd.f32 %v1219_v55, %v1166_v14 }
 0x19a   : > { %v808_v62 = vpop.f32.mrf.mxu0 }
 0x19b   : > { %v1843_v22 = vsel %vm889_vm1, %v814_v21, -1e+30  ;;  %v809_v35 = vadd.f32 %v1166_v14, %v808_v62 }
 0x19c   : > { %908 = vmax.xlane.f32.xlu1 %v1843_v22 }
 0x19d   : > { %v890_v31 = vsel %vm889_vm1, %v809_v35, -1e+30 }
 0x1a1   : > { %v1231_v23 = vpop.f32.mrf.mxu1 }
 0x1a2   : > { %v854_v24 = vadd.f32 %v1231_v23, %v1166_v14 }
 0x1a3   : > { %v848_v28 = vpop.f32.mrf.mxu1 }
 0x1a4   : > { %v849_v19 = vadd.f32 %v1166_v14, %v848_v28  ;;  %v899_v5 = vsel %vm889_vm1, %v854_v24, -1e+30 }
 0x1a5   : > { %924 = vmax.xlane.f32.xlu0 %v899_v5 }
 0x1a6   : > { %v1850_v32 = vsel %vm889_vm1, %v849_v19, -1e+30 }
 0x1a7   : > { %922 = vmax.xlane.f32.xlu1 %v1850_v32  ;;  %v1222_v33 = vpop.f32.mrf.mxu0 }
 0x1a8   : > { %v824_v36 = vadd.f32 %v1222_v33, %v1166_v14 }
 0x1a9   : > { %906 = vmax.xlane.f32.xlu0 %v890_v31  ;;  %v818_v30 = vpop.f32.mrf.mxu0 }
 0x1aa   : > { %v1857_v29 = vsel %vm889_vm1, %v824_v36, -1e+30  ;;  %v819_v40 = vadd.f32 %v1166_v14, %v818_v30 }
 0x1ac   : > { %v1872_v43 = vsel %vm889_vm1, %v819_v40, -1e+30 }
 0x1ad   : > { %912 = vmax.xlane.f32.xlu0 %v1857_v29 }
 0x1cb   : > { %v1234_v45 = vpop.f32.mrf.mxu1 }
 0x1cc   : > { %v864_v38 = vadd.f32 %v1234_v45, %v1166_v14 }
 0x1cd   : > { %v858_v39 = vpop.f32.mrf.mxu1 }
 0x1ce   : > { %v859_v47 = vadd.f32 %v1166_v14, %v858_v39  ;;  %v1862_v26 = vsel %vm889_vm1, %v864_v38, -1e+30 }
 0x1cf   : > { %928 = vmax.xlane.f32.xlu0 %v1862_v26 }
 0x1d0   : > { %v1867_v42 = vsel %vm889_vm1, %v859_v47, -1e+30 }
 0x1d1   : > { %926 = vmax.xlane.f32.xlu1 %v1867_v42 }
 0x1d3   : > { %910 = vmax.xlane.f32.xlu0 %v1872_v43 }
 0x1fa   : > { %v1225_v44 = vpop.f32.mrf.mxu0 }
 0x1fb   : > { %v834_v49 = vadd.f32 %v1225_v44, %v1166_v14 }
 0x1fc   : > { %v828_v9 = vpop.f32.mrf.mxu0 }
 0x1fd   : > { %v829_v34 = vadd.f32 %v1166_v14, %v828_v9  ;;  %v1877_v51 = vsel %vm889_vm1, %v834_v49, -1e+30 }
 0x1fe   : > { %916 = vmax.xlane.f32.xlu0 %v1877_v51  ;;  %v1237_v52 = vpop.f32.mrf.mxu1 }
 0x1ff   : > { %v874_v12 = vadd.f32 %v1237_v52, %v1166_v14  ;;  %v1882_v54 = vsel %vm889_vm1, %v829_v34, -1e+30 }
 0x200   : > { %914 = vmax.xlane.f32.xlu1 %v1882_v54  ;;  %v868_v56 = vpop.f32.mrf.mxu1 }
 0x201   : > { %v869_v57 = vadd.f32 %v1166_v14, %v868_v56  ;;  %v1887_v59 = vsel %vm889_vm1, %v874_v12, -1e+30 }
 0x202   : > { %932 = vmax.xlane.f32.xlu0 %v1887_v59 }
 0x203   : > { %v1892_v60 = vsel %vm889_vm1, %v869_v57, -1e+30 }
 0x204   : > { %930 = vmax.xlane.f32.xlu1 %v1892_v60 }
 0x210   : > { %v1228_v61 = vpop.f32.mrf.mxu0 }
 0x211   : > { %v844_v6 = vadd.f32 %v1228_v61, %v1166_v14 }
 0x212   : > { %v838_v63 = vpop.f32.mrf.mxu0 }
 0x213   : > { %v839_v37 = vadd.f32 %v1166_v14, %v838_v63  ;;  %v1897_v1 = vsel %vm889_vm1, %v844_v6, -1e+30 }
 0x214   : > { %920 = vmax.xlane.f32.xlu0 %v1897_v1  ;;  %v1240_v53 = vpop.f32.mrf.mxu1 }
 0x215   : > { %v884_v2 = vadd.f32 %v1240_v53, %v1166_v14  ;;  %v1902_v3 = vsel %vm889_vm1, %v839_v37, -1e+30 }
 0x216   : > { %918 = vmax.xlane.f32.xlu1 %v1902_v3  ;;  %v878_v4 = vpop.f32.mrf.mxu1 }
 0x217   : > { %v879_v25 = vadd.f32 %v1166_v14, %v878_v4  ;;  %v1907_v41 = vsel %vm889_vm1, %v884_v2, -1e+30 }
 0x218   : > { %936 = vmax.xlane.f32.xlu0 %v1907_v41 }
 0x219   : > { %v1912_v7 = vsel %vm889_vm1, %v879_v25, -1e+30 }
 0x21a   : > { %934 = vmax.xlane.f32.xlu1 %v1912_v7 }
 0x225   : > { %v909_v8 = vpop.xlane.xlu1 %908 }
 0x226   : > { %v939_v58 = vsub.f32 %v1843_v22, %v909_v8 }
 0x228   : > { %v956_v10 = vmul.f32 1.442695, %v939_v58 }
 0x22a   : > { %1325 = vpow2.f32 %v956_v10 }
 0x22e   : > { %v925_v46 = vpop.xlane.xlu0 %924 }
 0x22f   : > { %v947_v11 = vsub.f32 %v899_v5, %v925_v46 }
 0x230   : > { %v923_v15 = vpop.xlane.xlu1 %922 }
 0x231   : > { %v972_v27 = vmul.f32 1.442695, %v947_v11  ;;  %v946_v16 = vsub.f32 %v1850_v32, %v923_v15 }
 0x232   : > { %v907_v0 = vpop.xlane.xlu0 %906 }
 0x233   : > { %1327 = vpow2.f32 %v972_v27  ;;  %v938_v17 = vsub.f32 %v890_v31, %v907_v0  ;;  %v970_v48 = vmul.f32 1.442695, %v946_v16 }
 0x235   : > { %v954_v20 = vmul.f32 1.442695, %v938_v17 }
 0x236   : > { %v913_v18 = vpop.xlane.xlu0 %912 }
 0x237   : > { %v1326_v13 = vpop.eup %1325  ;;  %1329 = vpow2.f32 %v954_v20  ;;  %v941_v14 = vsub.f32 %v1857_v29, %v913_v18 }
 0x238   : > { %v1920_v55 = vsel %vm889_vm1, %v1326_v13, 0.0  ;;  %1331 = vpow2.f32 %v970_v48 }
 0x239   : > { %v960_v21 = vmul.f32 1.442695, %v941_v14  ;;  %1004 = vadd.xlane.f32.xlu0 %v1920_v55 }
 0x23b   : > { %1333 = vpow2.f32 %v960_v21 }
 0x240   : > { %v1328_v22 = vpop.eup %1327 }
 0x241   : > { %v1925_v62 = vsel %vm889_vm1, %v1328_v22, 0.0 }
 0x242   : > { %1020 = vadd.xlane.f32.xlu0 %v1925_v62 }
 0x244   : > { %v1330_v23 = vpop.eup %1329 }
 0x245   : > { %v1930_v24 = vsel %vm889_vm1, %v1330_v23, 0.0  ;;  %v1332_v28 = vpop.eup %1331 }
 0x246   : > { %1002 = vadd.xlane.f32.xlu1 %v1930_v24  ;;  %v1939_v5 = vsel %vm889_vm1, %v1332_v28, 0.0 }
 0x248   : > { %v1334_v35 = vpop.eup %1333 }
 0x249   : > { %v1935_v19 = vsel %vm889_vm1, %v1334_v35, 0.0 }
 0x24a   : > { %1008 = vadd.xlane.f32.xlu0 %v1935_v19  ;;  %1018 = vadd.xlane.f32.xlu1 %v1939_v5 }
 0x258   : > { %v929_v32 = vpop.xlane.xlu0 %928 }
 0x259   : > { %v949_v33 = vsub.f32 %v1862_v26, %v929_v32 }
 0x25a   : > { %v927_v36 = vpop.xlane.xlu1 %926 }
 0x25b   : > { %v976_v31 = vmul.f32 1.442695, %v949_v33  ;;  %v948_v29 = vsub.f32 %v1867_v42, %v927_v36 }
 0x25c   : > { %v911_v30 = vpop.xlane.xlu0 %910 }
 0x25d   : > { %1335 = vpow2.f32 %v976_v31  ;;  %v940_v45 = vsub.f32 %v1872_v43, %v911_v30  ;;  %v974_v38 = vmul.f32 1.442695, %v948_v29 }
 0x25f   : > { %v958_v39 = vmul.f32 1.442695, %v940_v45 }
 0x261   : > { %1337 = vpow2.f32 %v958_v39 }
 0x262   : > { %1339 = vpow2.f32 %v974_v38 }
 0x26a   : > { %v1336_v40 = vpop.eup %1335 }
 0x26b   : > { %v1948_v47 = vsel %vm889_vm1, %v1336_v40, 0.0 }
 0x26c   : > { %1024 = vadd.xlane.f32.xlu0 %v1948_v47 }
 0x26e   : > { %v1338_v26 = vpop.eup %1337 }
 0x26f   : > { %v1953_v44 = vsel %vm889_vm1, %v1338_v26, 0.0  ;;  %v1340_v42 = vpop.eup %1339 }
 0x270   : > { %1006 = vadd.xlane.f32.xlu1 %v1953_v44  ;;  %v1958_v43 = vsel %vm889_vm1, %v1340_v42, 0.0 }
 0x274   : > { %1022 = vadd.xlane.f32.xlu1 %v1958_v43 }
 0x287   : > { %v917_v49 = vpop.xlane.xlu0 %916 }
 0x288   : > { %v943_v9 = vsub.f32 %v1877_v51, %v917_v49 }
 0x289   : > { %v915_v34 = vpop.xlane.xlu1 %914 }
 0x28a   : > { %v964_v52 = vmul.f32 1.442695, %v943_v9  ;;  %v942_v12 = vsub.f32 %v1882_v54, %v915_v34 }
 0x28b   : > { %v933_v56 = vpop.xlane.xlu0 %932 }
 0x28c   : > { %1341 = vpow2.f32 %v964_v52  ;;  %v962_v57 = vmul.f32 1.442695, %v942_v12  ;;  %v951_v61 = vsub.f32 %v1887_v59, %v933_v56 }
 0x28d   : > { %v931_v6 = vpop.xlane.xlu1 %930 }
 0x28e   : > { %1343 = vpow2.f32 %v962_v57  ;;  %v980_v63 = vmul.f32 1.442695, %v951_v61  ;;  %v950_v37 = vsub.f32 %v1892_v60, %v931_v6 }
 0x290   : > { %1345 = vpow2.f32 %v980_v63  ;;  %v978_v53 = vmul.f32 1.442695, %v950_v37 }
 0x292   : > { %1347 = vpow2.f32 %v978_v53 }
 0x299   : > { %v1342_v2 = vpop.eup %1341 }
 0x29a   : > { %v1967_v51 = vsel %vm889_vm1, %v1342_v2, 0.0 }
 0x29b   : > { %v1344_v4 = vpop.eup %1343  ;;  %1012 = vadd.xlane.f32.xlu0 %v1967_v51 }
 0x29c   : > { %v1972_v54 = vsel %vm889_vm1, %v1344_v4, 0.0 }
 0x29d   : > { %v1346_v59 = vpop.eup %1345  ;;  %v921_v25 = vpop.xlane.xlu0 %920  ;;  %1010 = vadd.xlane.f32.xlu1 %v1972_v54 }
 0x29e   : > { %v945_v60 = vsub.f32 %v1897_v1, %v921_v25  ;;  %v1978_v8 = vsel %vm889_vm1, %v1346_v59, 0.0 }
 0x29f   : > { %v1348_v58 = vpop.eup %1347  ;;  %1028 = vadd.xlane.f32.xlu0 %v1978_v8  ;;  %v919_v10 = vpop.xlane.xlu1 %918 }
 0x2a0   : > { %v968_v46 = vmul.f32 1.442695, %v945_v60  ;;  %v944_v11 = vsub.f32 %v1902_v3, %v919_v10  ;;  %v1984_v15 = vsel %vm889_vm1, %v1348_v58, 0.0 }
 0x2a1   : > { %v937_v27 = vpop.xlane.xlu0 %936  ;;  %1026 = vadd.xlane.f32.xlu1 %v1984_v15 }
 0x2a2   : > { %1349 = vpow2.f32 %v968_v46  ;;  %v966_v1 = vmul.f32 1.442695, %v944_v11  ;;  %v953_v16 = vsub.f32 %v1907_v41, %v937_v27 }
 0x2a3   : > { %v935_v0 = vpop.xlane.xlu1 %934 }
 0x2a4   : > { %1351 = vpow2.f32 %v966_v1  ;;  %v984_v17 = vmul.f32 1.442695, %v953_v16  ;;  %v952_v48 = vsub.f32 %v1912_v7, %v935_v0 }
 0x2a6   : > { %1353 = vpow2.f32 %v984_v17  ;;  %v982_v20 = vmul.f32 1.442695, %v952_v48 }
 0x2a8   : > { %1355 = vpow2.f32 %v982_v20 }
 0x2af   : > { %v1350_v3 = vpop.eup %1349 }
 0x2b0   : > { %v1991_v18 = vsel %vm889_vm1, %v1350_v3, 0.0 }
 0x2b1   : > { %v1352_v13 = vpop.eup %1351  ;;  %1016 = vadd.xlane.f32.xlu0 %v1991_v18 }
 0x2b2   : > { %v1996_v41 = vsel %vm889_vm1, %v1352_v13, 0.0 }
 0x2b3   : > { %v1354_v14 = vpop.eup %1353  ;;  %1014 = vadd.xlane.f32.xlu1 %v1996_v41 }
 0x2b4   : > { %v2001_v7 = vsel %vm889_vm1, %v1354_v14, 0.0 }
 0x2b5   : > { %v1356_v21 = vpop.eup %1355  ;;  %1032 = vadd.xlane.f32.xlu0 %v2001_v7 }
 0x2b6   : > { %v2006_v22 = vsel %vm889_vm1, %v1356_v21, 0.0 }
 0x2b7   : > { %1030 = vadd.xlane.f32.xlu1 %v2006_v22 }
 0x2c2   : > { %v1005_v23 = vpop.xlane.xlu0 %1004 }
 0x2c3   : > { %1357 = vrcp.f32 %v1005_v23 }
 0x2cb   : > { %v1021_v28 = vpop.xlane.xlu0 %1020 }
 0x2cc   : > { %1359 = vrcp.f32 %v1021_v28 }
 0x2cf   : > { %v1003_v35 = vpop.xlane.xlu1 %1002 }
 0x2d0   : > { %v1358_v32 = vpop.eup %1357  ;;  %1361 = vrcp.f32 %v1003_v35 }
 0x2d1   : > { %v1037_v33 = vmul.f32 %v1358_v32, %v1920_v55 }
 0x2d3   : > { %1067 = vst [vmem:[%s2013_s10 + $0x8] sm:$0xff] %v1037_v33  ;;  %v1009_v50 = vpop.xlane.xlu0 %1008  ;;  %v1019_v36 = vpop.xlane.xlu1 %1018 }
 0x2d4   : > { %1363 = vrcp.f32 %v1009_v50 }
 0x2d5   : > { %1365 = vrcp.f32 %v1019_v36 }
 0x2d9   : > { %v1360_v31 = vpop.eup %1359 }
 0x2da   : > { %v1053_v29 = vmul.f32 %v1360_v31, %v1925_v62 }
 0x2dc   : > { %1075 = vst [vmem:[%s2013_s10 + $0x48] sm:$0xff] %v1053_v29 }
 0x2dd   : > { %v1362_v30 = vpop.eup %1361 }
 0x2de   : > { %v1035_v45 = vmul.f32 %v1362_v30, %v1930_v24 }
 0x2e0   : > { %1066 = vst [vmem:[%s2013_s10] sm:$0xff] %v1035_v45 }
 0x2e1   : > { %v1364_v55 = vpop.eup %1363 }
 0x2e2   : > { %v1366_v38 = vpop.eup %1365  ;;  %v1041_v39 = vmul.f32 %v1364_v55, %v1935_v19 }
 0x2e3   : > { %v1051_v40 = vmul.f32 %v1366_v38, %v1939_v5 }
 0x2e4   : > { %1069 = vst [vmem:[%s2013_s10 + $0x18] sm:$0xff] %v1041_v39 }
 0x2e5   : > { %1074 = vst [vmem:[%s2013_s10 + $0x40] sm:$0xff] %v1051_v40 }
 0x2f5   : > { %v1025_v26 = vpop.xlane.xlu0 %1024 }
 0x2f6   : > { %1367 = vrcp.f32 %v1025_v26 }
 0x2f9   : > { %v1007_v42 = vpop.xlane.xlu1 %1006 }
 0x2fa   : > { %1369 = vrcp.f32 %v1007_v42 }
 0x2fd   : > { %v1023_v62 = vpop.xlane.xlu1 %1022 }
 0x2fe   : > { %1371 = vrcp.f32 %v1023_v62 }
 0x303   : > { %v1368_v49 = vpop.eup %1367 }
 0x304   : > { %v1057_v24 = vmul.f32 %v1368_v49, %v1948_v47 }
 0x306   : > { %1077 = vst [vmem:[%s2013_s10 + $0x58] sm:$0xff] %v1057_v24 }
 0x307   : > { %v1370_v9 = vpop.eup %1369 }
 0x308   : > { %v1039_v34 = vmul.f32 %v1370_v9, %v1953_v44 }
 0x30a   : > { %1068 = vst [vmem:[%s2013_s10 + $0x10] sm:$0xff] %v1039_v34 }
 0x30b   : > { %v1372_v19 = vpop.eup %1371 }
 0x30c   : > { %v1055_v5 = vmul.f32 %v1372_v19, %v1958_v43 }
 0x30e   : > { %1076 = vst [vmem:[%s2013_s10 + $0x50] sm:$0xff] %v1055_v5 }
 0x324   : > { %v1013_v52 = vpop.xlane.xlu0 %1012 }
 0x325   : > { %1373 = vrcp.f32 %v1013_v52 }
 0x326   : > { %v1011_v12 = vpop.xlane.xlu1 %1010 }
 0x327   : > { %1375 = vrcp.f32 %v1011_v12 }
 0x328   : > { %v1029_v56 = vpop.xlane.xlu0 %1028 }
 0x329   : > { %1377 = vrcp.f32 %v1029_v56 }
 0x32a   : > { %v1027_v47 = vpop.xlane.xlu1 %1026 }
 0x32b   : > { %1379 = vrcp.f32 %v1027_v47 }
 0x332   : > { %v1374_v57 = vpop.eup %1373 }
 0x333   : > { %v1045_v44 = vmul.f32 %v1374_v57, %v1967_v51 }
 0x334   : > { %v1376_v61 = vpop.eup %1375 }
 0x335   : > { %1071 = vst [vmem:[%s2013_s10 + $0x28] sm:$0xff] %v1045_v44  ;;  %v1043_v6 = vmul.f32 %v1376_v61, %v1972_v54 }
 0x336   : > { %v1378_v43 = vpop.eup %1377 }
 0x337   : > { %1070 = vst [vmem:[%s2013_s10 + $0x20] sm:$0xff] %v1043_v6  ;;  %v1061_v63 = vmul.f32 %v1378_v43, %v1978_v8 }
 0x338   : > { %v1380_v37 = vpop.eup %1379 }
 0x339   : > { %1079 = vst [vmem:[%s2013_s10 + $0x68] sm:$0xff] %v1061_v63  ;;  %v1059_v53 = vmul.f32 %v1380_v37, %v1984_v15 }
 0x33a   : > { %v1017_v2 = vpop.xlane.xlu0 %1016 }
 0x33b   : > { %1078 = vst [vmem:[%s2013_s10 + $0x60] sm:$0xff] %v1059_v53  ;;  %1381 = vrcp.f32 %v1017_v2 }
 0x33c   : > { %v1015_v51 = vpop.xlane.xlu1 %1014 }
 0x33d   : > { %1383 = vrcp.f32 %v1015_v51 }
 0x33e   : > { %v1033_v4 = vpop.xlane.xlu0 %1032 }
 0x33f   : > { %1385 = vrcp.f32 %v1033_v4 }
 0x340   : > { %v1031_v54 = vpop.xlane.xlu1 %1030 }
 0x341   : > { %1387 = vrcp.f32 %v1031_v54 }
 0x348   : > { %v1382_v59 = vpop.eup %1381 }
 0x349   : > { %v1049_v25 = vmul.f32 %v1382_v59, %v1991_v18 }
 0x34a   : > { %v1384_v60 = vpop.eup %1383 }
 0x34b   : > { %1073 = vst [vmem:[%s2013_s10 + $0x38] sm:$0xff] %v1049_v25  ;;  %v1047_v8 = vmul.f32 %v1384_v60, %v1996_v41 }
 0x34c   : > { %v1386_v58 = vpop.eup %1385 }
 0x34d   : > { %1072 = vst [vmem:[%s2013_s10 + $0x30] sm:$0xff] %v1047_v8  ;;  %v1065_v10 = vmul.f32 %v1386_v58, %v2001_v7 }
 0x34e   : > { %v1388_v46 = vpop.eup %1387 }
 0x34f   : > { %1081 = vst [vmem:[%s2013_s10 + $0x78] sm:$0xff] %v1065_v10  ;;  %v1063_v11 = vmul.f32 %v1388_v46, %v2006_v22 }
 0x351   : > { %1080 = vst [vmem:[%s2013_s10 + $0x70] sm:$0xff] %v1063_v11 }
 0x352   : > { %1402 = shalt.err (!%p1399_p3)
}
 0x353   : > { %s1403_s26 = scalar_lea.hbm %s2048_s15, 2048  ;;  %s1407_s7 = scalar_lea.hbm %s2102_s5, 6144 }
 0x354   : > { %p1404_p4 = scmp.ne.s32.totalorder %s2048_s15, %s1403_s26  ;;  %p1408_p9 = scmp.lt.s32.totalorder %s2048_s15, %s2102_s5 }
 0x355   : > { %p1409_p10 = scmp.lt.s32.totalorder %s1407_s7, %s1403_s26 }
 0x356   : > { %p1405_p7 = pnand %p1404_p4, %p1526_p5 }
 0x357   : > { %p1410_p11 = por %p1409_p10, %p1408_p9 }
 0x358   : > { %p1406_p8 = pneg %p1405_p7 }
 0x35a   : > { %p1411_p12 = pnand %p1410_p11, %p1406_p8 }
 0x35c   : > { %1414 = shalt.err (!%p1411_p12)
}
 0x35d   : > { %s1456_s10 = smov 128   ;;  %s1457_s11 = smov 8  }
 0x35e   : > { %1249 = dma.vmem_to_hbm [thread:$0]  (%p1526_p5), %s2050_s12, 2048, %s2048_s15, %s2057_s22, %s1456_s10, %s1456_s10, %s1457_s11  }
 0x35f PF: > { %p1255_p13 = scmp.ge.s32.totalorder %s1449_s21, 2  ;;  %s1111_s13 = sand.u32 1, %s1437_s18  }
 0x360   : > { %s1112_s14 = scalar_lea.sflag [#allocation3], %s1111_s13 }
 0x361   : > { %p1252_p0 = pnand %p1255_p13, %p1530_p6 }
 0x363   : > { %p1253_p1 = pneg %p1252_p0 }
 0x365   : > { %1432 = dma.done.wait (%p1253_p1), %s1112_s14, 2048  }
 0x366   : > { %1434 = vsyncadd (%p1253_p1), %s1112_s14, 4294965248  ;;  %p15_p2 = scmp.ge.s32.totalorder %s1513_s24, 5   ;;  %s2105_s18 = smov %s1441_s19 }
 0x367   : > { %s2106_s19 = smov %s1445_s20  ;;  %s2107_s20 = smov %s1524_s27 }
 0x368   : > { %s2108_s21 = smov %s1513_s24  ;;  %17 = sbr.rel (!%p15_p2) target bundleno = 3 (0x3), region = 75 }
 0x36d   :  { %1117 = vsyncpa [#allocation3], 1 }
 0x36e   :  { %1119 = vsyncpa [#allocation3 + $0x1], 1 }

</bundles_post_ra>
